<compile_context>
chip_gen: v6e
topology: v6e:2x2x1
jax: 0.10.0
libtpu: 0.0.40
codegen_flags: <defaults>
</compile_context>

<pallas_src>
import math

import jax
import jax.numpy as jnp
from jax.experimental import pallas as pl
from jax.experimental.pallas import tpu as pltpu

_MIB = 1024 * 1024


def _rup(x, m):
    return ((x + m - 1) // m) * m


def _pick_tile(dim, target, align):
    """Largest `align`-aligned tile <= target that divides dim (else the full dim)."""
    if dim <= target:
        return dim
    t = (target // align) * align
    while t >= align:
        if dim % t == 0:
            return t
        t -= align
    return dim


def _vmem_ceiling():
    """Physical VMEM minus headroom for compiler-internal scratch / pipeline metadata."""
    try:
        cap = int(pltpu.get_tpu_info().vmem_capacity_bytes)
    except Exception:
        cap = 64 * _MIB  # most conservative generation (v7x per-core VMEM)
    return max(cap - 8 * _MIB, 16 * _MIB)


def _compiler_params(semantics, vmem_bytes_needed):
    limit = int(min(max(vmem_bytes_needed, 32 * _MIB), _vmem_ceiling()))
    return pltpu.CompilerParams(dimension_semantics=semantics,
                                vmem_limit_bytes=limit)


# ---------------------------------------------------------------------------
# Tiled linear projection kernel:  y = x @ w + b
# ---------------------------------------------------------------------------
def _linear_kernel(x_ref, w_ref, b_ref, o_ref, acc_ref):
    k = pl.program_id(2)

    @pl.when(k == 0)
    def _init():
        acc_ref[...] = jnp.zeros_like(acc_ref)

    acc_ref[...] += jnp.dot(x_ref[...], w_ref[...],
                            preferred_element_type=jnp.float32)

    @pl.when(k == pl.num_programs(2) - 1)
    def _finalize():
        o_ref[...] = (acc_ref[...] + b_ref[...]).astype(o_ref.dtype)


def linear_pallas(x2d, w_t, b, *, tm=512, tn=512, tk=512):
    """x2d: (M, Din), w_t: (Din, Dout) pre-transposed, b: (Dout,)."""
    M, Din = x2d.shape
    Dout = w_t.shape[1]
    # When M = B*S is small, prefer a wider N tile so each x tile is reused more.
    if M <= 256:
        tn = max(tn, 1024)
    tm = _pick_tile(M, tm, 8)
    tn = _pick_tile(Dout, tn, 128)
    tk = _pick_tile(Din, tk, 128)
    # TODO(synk): non-divisible M/Din/Dout fall back to one full-extent block along
    # that axis; pad or use a masked tail for very large ragged shapes.
    grid = (M // tm, Dout // tn, Din // tk)

    dsz = jnp.dtype(x2d.dtype).itemsize
    blk = (_rup(tm, 8) * _rup(tk, 128) + _rup(tk, 8) * _rup(tn, 128)
           + 8 * _rup(tn, 128) + _rup(tm, 8) * _rup(tn, 128)) * dsz
    scratch = _rup(tm, 8) * _rup(tn, 128) * 4
    ce = pl.CostEstimate(
        flops=2 * M * Dout * Din,
        transcendentals=0,
        bytes_accessed=dsz * (M * Din + Din * Dout + Dout + M * Dout))

    return pl.pallas_call(
        _linear_kernel,
        out_shape=jax.ShapeDtypeStruct((M, Dout), x2d.dtype),
        grid=grid,
        in_specs=[
            pl.BlockSpec((tm, tk), lambda i, j, k: (i, k)),
            pl.BlockSpec((tk, tn), lambda i, j, k: (k, j)),
            pl.BlockSpec((1, tn), lambda i, j, k: (0, j)),   # bias follows the N tile
        ],
        out_specs=pl.BlockSpec((tm, tn), lambda i, j, k: (i, j)),
        scratch_shapes=[pltpu.VMEM((tm, tn), jnp.float32)],
        compiler_params=_compiler_params(("parallel", "parallel", "arbitrary"),
                                         2 * blk + scratch + 4 * _MIB),
        cost_estimate=ce,
    )(x2d, w_t, b.reshape(1, Dout))


# ---------------------------------------------------------------------------
# Flash-style attention kernel. Heads stay packed in the lane dim (D = H * d_k).
# ---------------------------------------------------------------------------
def _make_flash_kernel(num_heads, d_k, scale, has_mask, apply_scale, nq, nk):
    def kernel(*refs):
        i = 0
        sched_ref = cnt_ref = mask_ref = None
        if has_mask:
            sched_ref, cnt_ref, mask_ref = refs[0], refs[1], refs[2]
            i = 3
        q_ref, k_ref, v_ref, o_ref = refs[i], refs[i + 1], refs[i + 2], refs[i + 3]
        m_ref, l_ref, acc_ref = refs[i + 4], refs[i + 5], refs[i + 6]
        qs_ref = refs[i + 7] if apply_scale else None

        b = pl.program_id(0)
        qi = pl.program_id(1)
        ki = pl.program_id(2)

        @pl.when(ki == 0)
        def _init():
            m_ref[...] = jnp.full_like(m_ref, -jnp.inf)
            l_ref[...] = jnp.zeros_like(l_ref)
            acc_ref[...] = jnp.zeros_like(acc_ref)
            if apply_scale:
                # 1/sqrt(d_k) applied once per q block (kv-loop invariant).
                qs_ref[...] = q_ref[0] * jnp.asarray(scale, q_ref.dtype)

        def compute():
            if has_mask:
                # Additive mask bias built once per tile, shared by all heads.
                bias = jnp.where(mask_ref[0] == 0, jnp.float32(-1e9), jnp.float32(0.0))
            for h in range(num_heads):
                lo = h * d_k
                if apply_scale:
                    q_h = qs_ref[:, lo:lo + d_k]
                else:
                    q_h = q_ref[0, :, lo:lo + d_k]
                k_h = k_ref[0, :, lo:lo + d_k]
                v_h = v_ref[0, :, lo:lo + d_k]

                # Q @ K^T without materializing a transposed K tile.
                s = jax.lax.dot_general(
                    q_h, k_h, dimension_numbers=(((1,), (1,)), ((), ())),
                    preferred_element_type=jnp.float32)        # (tq, tkv) f32
                if has_mask:
                    s = s + bias

                m_prev = m_ref[h]                               # (tq, 1)
                m_new = jnp.maximum(m_prev, s.max(axis=-1, keepdims=True))
                alpha = jnp.exp(m_prev - m_new)
                p = jnp.exp(s - m_new)
                l_ref[h] = alpha * l_ref[h] + p.sum(axis=-1, keepdims=True)
                acc_ref[h] = alpha * acc_ref[h] + jnp.dot(
                    p.astype(v_h.dtype), v_h, preferred_element_type=jnp.float32)
                m_ref[h] = m_new

        if has_mask:
            # Skip kv tiles whose mask is entirely zero (their blocks are never
            # scheduled, so their DMAs are elided too - block index repeats).
            pl.when(ki < cnt_ref[b * nq + qi])(compute)
        else:
            compute()

        # TODO(synk): nn.Dropout(p=0.1) on the attention probabilities is train-mode
        # only; modeled as eval-mode identity here.

        @pl.when(ki == pl.num_programs(2) - 1)
        def _finalize():
            def head_out(h):
                l_h = l_ref[h]
                inv_l = pl.reciprocal(l_h, approx=True)
                if has_mask:
                    # Rows with zero unmasked keys across the whole schedule -> 0
                    # (the reference gives uniform attention there; pathological case).
                    inv_l = jnp.where(l_h > 0.0, inv_l, 0.0)
                return (acc_ref[h] * inv_l).astype(o_ref.dtype)

            if d_k % 128 == 0:
                for h in range(num_heads):
                    o_ref[0, :, h * d_k:(h + 1) * d_k] = head_out(h)
            else:
                o_ref[0] = jnp.concatenate([head_out(h) for h in range(num_heads)],
                                           axis=-1)

    return kernel


def _kv_schedule(mask_bool, B, Sq, tq, Skv, tkv):
    """Per (batch, q-block): ordered indices of kv blocks with any unmasked entry."""
    nq, nk = Sq // tq, Skv // tkv
    Bm, Sqm, Skvm = mask_bool.shape
    if Sqm == 1:
        any_q = mask_bool                                              # (Bm, 1, Skvm)
    else:
        any_q = mask_bool.reshape(Bm, nq, tq, Skvm).any(axis=2)        # (Bm, nq, Skvm)
    if Skvm == 1:
        any_t = any_q                                                  # (Bm, *, 1)
    else:
        any_t = any_q.reshape(Bm, any_q.shape[1], nk, tkv).any(axis=3)  # (Bm, *, nk)
    any_t = jnp.broadcast_to(any_t, (B, nq, nk))
    counts = any_t.sum(axis=-1, dtype=jnp.int32)                       # (B, nq)
    idx = jnp.arange(nk, dtype=jnp.int32)
    keyed = jnp.where(any_t, idx, nk)                                  # unneeded sort last
    order = jnp.sort(keyed, axis=-1).astype(jnp.int32)
    last = jnp.take_along_axis(order, jnp.maximum(counts - 1, 0)[..., None], axis=-1)
    sched = jnp.where(order >= nk, jnp.where(counts[..., None] > 0, last, 0), order)
    return sched.astype(jnp.int32), counts


def flash_attention(Q, K, V, num_heads, mask=None, *, scale=1.0, tq=256, tkv=256):
    """Q: (B, Sq, D), K/V: (B, Skv, D) with D = num_heads * d_k.
    mask: None or 3-D with broadcastable dims (batch / q / kv may be 1)."""
    B, Sq, D = Q.shape
    Skv = K.shape[1]
    assert D % num_heads == 0
    d_k = D // num_heads
    has_mask = mask is not None
    apply_scale = (float(scale) != 1.0)

    dsz = jnp.dtype(Q.dtype).itemsize
    sub = {4: 8, 2: 16, 1: 32}.get(dsz, 8)
    q_align = max(sub, 32) if has_mask else sub   # int8 mask packs 32 rows / sublane grp
    # TODO(synk): non-divisible Sq/Skv fall back to one full-extent block; pad sequences
    # or add a masked tail for ragged shapes (full-sequence K/V may not fit 64 MiB VMEM).
    tq = _pick_tile(Sq, tq, q_align)
    tkv = _pick_tile(Skv, tkv, 128)
    nq, nk = Sq // tq, Skv // tkv
    grid = (B, nq, nk)

    kernel = _make_flash_kernel(num_heads, d_k, float(scale), has_mask, apply_scale,
                                nq, nk)

    scratch_shapes = [
        pltpu.VMEM((num_heads, tq, 1), jnp.float32),     # running max
        pltpu.VMEM((num_heads, tq, 1), jnp.float32),     # running denominator
        pltpu.VMEM((num_heads, tq, d_k), jnp.float32),   # running output accumulator
    ]
    if apply_scale:
        scratch_shapes.append(pltpu.VMEM((tq, D), Q.dtype))   # pre-scaled Q tile

    # VMEM budget with lane/sublane padding (the (H,tq,1) buffers pad to 128 lanes).
    lane = 128
    d_pad = _rup(D, lane)
    blk = (2 * _rup(tq, 8) + 2 * _rup(tkv, 8)) * d_pad * dsz          # q + k + v + out
    scratch = (2 * num_heads * _rup(tq, 8) * lane
               + num_heads * _rup(tq, 8) * _rup(d_k, lane)) * 4
    if apply_scale:
        scratch += _rup(tq, 8) * d_pad * dsz

    flops = 4 * B * Sq * Skv * D
    transc = B * num_heads * Sq * Skv
    bytes_acc = dsz * (2 * B * Sq * D + 2 * B * Skv * D)
    out_shape = jax.ShapeDtypeStruct((B, Sq, D), Q.dtype)

    if not has_mask:
        cp = _compiler_params(("parallel", "parallel", "arbitrary"),
                              2 * blk + scratch + 4 * _MIB)
        return pl.pallas_call(
            kernel,
            out_shape=out_shape,
            grid=grid,
            in_specs=[
                pl.BlockSpec((1, tq, D), lambda b, qi, ki: (b, qi, 0)),
                pl.BlockSpec((1, tkv, D), lambda b, qi, ki: (b, ki, 0)),
                pl.BlockSpec((1, tkv, D), lambda b, qi, ki: (b, ki, 0)),
            ],
            out_specs=pl.BlockSpec((1, tq, D), lambda b, qi, ki: (b, qi, 0)),
            scratch_shapes=scratch_shapes,
            compiler_params=cp,
            cost_estimate=pl.CostEstimate(flops=flops, transcendentals=transc,
                                          bytes_accessed=bytes_acc),
        )(Q, K, V)

    # ---- masked path: scalar-prefetched kv schedule + broadcast-aware mask spec ----
    assert mask.ndim == 3, "mask must be 3-D (batch, q, kv); dims may be 1 (broadcast)"
    Bm, Sqm, Skvm = mask.shape
    assert Bm in (1, B) and Sqm in (1, Sq) and Skvm in (1, Skv)
    mask_bool = (mask != 0)
    mask_i8 = mask_bool.astype(jnp.int8)           # original shape only, never broadcast
    sched, counts = _kv_schedule(mask_bool, B, Sq, tq, Skv, tkv)
    sched = sched.reshape(-1)                      # (B*nq*nk,)  int32, SMEM
    counts = counts.reshape(-1)                    # (B*nq,)     int32, SMEM

    mq = tq if Sqm > 1 else 1
    mk = tkv if Skvm > 1 else 1
    blk += _rup(mq, 32) * _rup(mk, lane)           # int8 mask tile
    bytes_acc += int(Bm * Sqm * Skvm)

    def mask_map(b, qi, ki, sched_ref, cnt_ref):
        bi = b if Bm > 1 else 0
        qj = qi if Sqm > 1 else 0
        kj = sched_ref[(b * nq + qi) * nk + ki] if Skvm > 1 else 0
        return (bi, qj, kj)

    def kv_map(b, qi, ki, sched_ref, cnt_ref):
        return (b, sched_ref[(b * nq + qi) * nk + ki], 0)

    def q_map(b, qi, ki, sched_ref, cnt_ref):
        return (b, qi, 0)

    grid_spec = pltpu.PrefetchScalarGridSpec(
        num_scalar_prefetch=2,
        grid=grid,
        in_specs=[
            pl.BlockSpec((1, mq, mk), mask_map),
            pl.BlockSpec((1, tq, D), q_map),
            pl.BlockSpec((1, tkv, D), kv_map),
            pl.BlockSpec((1, tkv, D), kv_map),
        ],
        out_specs=pl.BlockSpec((1, tq, D), q_map),
        scratch_shapes=scratch_shapes,
    )
    cp = _compiler_params(("parallel", "parallel", "arbitrary"),
                          2 * blk + scratch + 4 * _MIB)
    return pl.pallas_call(
        kernel,
        out_shape=out_shape,
        grid_spec=grid_spec,
        compiler_params=cp,
        cost_estimate=pl.CostEstimate(flops=flops, transcendentals=transc,
                                      bytes_accessed=bytes_acc),
    )(sched, counts, mask_i8, Q, K, V)


# ---------------------------------------------------------------------------
# Parameters / full MultiHeadedAttention forward
# ---------------------------------------------------------------------------
def init_mha_params(key, h, d_model, dtype=jnp.float32):
    """Raw PyTorch-equivalent parameters (weights stored as (d_in, d_out) == W.T)."""
    assert d_model % h == 0
    ks = jax.random.split(key, 8)
    bound = 1.0 / math.sqrt(d_model)

    def w(k):
        return jax.random.uniform(k, (d_model, d_model), dtype, -bound, bound)

    def b(k):
        return jax.random.uniform(k, (d_model,), dtype, -bound, bound)

    return {
        "h": h, "d_k": d_model // h,
        "wq": w(ks[0]), "bq": b(ks[1]),
        "wk": w(ks[2]), "bk": b(ks[3]),
        "wv": w(ks[4]), "bv": b(ks[5]),
        "wo": w(ks[6]), "bo": b(ks[7]),
    }


def prepare_mha_params(params):
    """One-time transform: fold 1/sqrt(d_k) into the Q projection and build a fused
    QKV weight for self-attention. Genuinely free (done once, not per call)."""
    p = dict(params)
    scale = 1.0 / math.sqrt(params["d_k"])
    p["wq"] = params["wq"] * scale
    p["bq"] = params["bq"] * scale
    p["scale_folded"] = True
    p["wqkv"] = jnp.concatenate([p["wq"], p["wk"], p["wv"]], axis=1)   # (D, 3D)
    p["bqkv"] = jnp.concatenate([p["bq"], p["bk"], p["bv"]])           # (3D,)
    return p


def multi_headed_attention(params, query, key, value, mask=None):
    """Forward pass matching the PyTorch module (eval mode)."""
    B, Sq, D = query.shape
    h = params["h"]
    scale_folded = params.get("scale_folded", False)
    scale = 1.0 if scale_folded else 1.0 / math.sqrt(params["d_k"])
    is_self_attn = (query is key) and (key is value)

    if is_self_attn and "wqkv" in params:
        # Fused QKV projection: one activation pass over a (D, 3D) weight.
        qkv = linear_pallas(query.reshape(-1, D), params["wqkv"], params["bqkv"])
        Q = qkv[:, :D].reshape(B, Sq, D)
        K = qkv[:, D:2 * D].reshape(B, Sq, D)
        V = qkv[:, 2 * D:].reshape(B, Sq, D)
    else:
        def proj(x, w, b):
            bx, sx, _ = x.shape
            return linear_pallas(x.reshape(-1, D), w, b).reshape(bx, sx, D)

        Q = proj(query, params["wq"], params["bq"])
        K = proj(key, params["wk"], params["bk"])
        V = proj(value, params["wv"], params["bv"])

    # mask.unsqueeze(1) semantics: heads never leave the lane dim, so the kernel only
    # needs the (possibly broadcast) (B?, Sq?, Skv) mask; it is NOT broadcast in HBM.
    x = flash_attention(Q, K, V, h, mask, scale=scale)        # (B, Sq, D), heads packed
    out = linear_pallas(x.reshape(-1, D), params["wo"], params["bo"])
    return out.reshape(B, Sq, D)


# ---------------------------------------------------------------------------
# Pure-JAX reference (sanity check) - always uses the RAW (un-folded) parameters.
# ---------------------------------------------------------------------------
def mha_reference(params, query, key, value, mask=None):
    B, Sq, D = query.shape
    h, d_k = params["h"], params["d_k"]

    def lin(x, w, b):
        return x @ w + b

    def split(x):
        return x.reshape(x.shape[0], -1, h, d_k).transpose(0, 2, 1, 3)

    Q = split(lin(query, params["wq"], params["bq"]))
    K = split(lin(key, params["wk"], params["bk"]))
    V = split(lin(value, params["wv"], params["bv"]))
    scores = jnp.einsum("bhqd,bhkd->bhqk", Q, K) / math.sqrt(d_k)
    if mask is not None:
        scores = jnp.where(mask[:, None, :, :] == 0, -1e9, scores)
    p = jax.nn.softmax(scores, axis=-1)
    x = jnp.einsum("bhqk,bhkd->bhqd", p, V)
    x = x.transpose(0, 2, 1, 3).reshape(B, Sq, D)
    return lin(x, params["wo"], params["bo"])


if __name__ == "__main__":
    B, S, D, H = 2, 8, 32, 4

    root = jax.random.PRNGKey(0)
    k_params, k_q, k_k, k_v = jax.random.split(root, 4)

    raw_params = init_mha_params(k_params, H, D)        # PyTorch-equivalent
    fast_params = prepare_mha_params(raw_params)        # scale folded + fused QKV weight

    query = jax.random.normal(k_q, (B, S, D), jnp.float32)
    key = jax.random.normal(k_k, (B, S, D), jnp.float32)
    value = jax.random.normal(k_v, (B, S, D), jnp.float32)

    # 1) cross-attention with a full causal mask (folded-scale path, separate projections,
    #    masked kernel with the kv-tile schedule)
    causal = jnp.broadcast_to(jnp.tril(jnp.ones((S, S), jnp.int32)), (B, S, S))
    out = jax.block_until_ready(multi_headed_attention(fast_params, query, key, value, causal))
    ref = mha_reference(raw_params, query, key, value, causal)
    assert out.shape == (B, S, D)
    assert jnp.allclose(out, ref, atol=5e-3, rtol=5e-3), "masked MHA mismatch vs reference"

    # 2) self-attention without a mask (fused QKV projection + unmasked kernel)
    out2 = jax.block_until_ready(multi_headed_attention(fast_params, query, query, query, None))
    ref2 = mha_reference(raw_params, query, query, query, None)
    assert jnp.allclose(out2, ref2, atol=5e-3, rtol=5e-3), "unmasked MHA mismatch vs reference"

    # 3) raw (un-folded) params + broadcast key-padding mask of shape (B, 1, Skv)
    #    (exercises the in-kernel Q-scale scratch and the broadcast mask index_map)
    pad_mask = jnp.broadcast_to((jnp.arange(S) < 6).astype(jnp.int32)[None, None, :], (B, 1, S))
    out3 = jax.block_until_ready(multi_headed_attention(raw_params, query, key, value, pad_mask))
    ref3 = mha_reference(raw_params, query, key, value, pad_mask)
    assert jnp.allclose(out3, ref3, atol=5e-3, rtol=5e-3), "padding-mask MHA mismatch vs reference"

    print("KERNEL_OK")
</pallas_src>

<mosaic_0001>
module attributes {stable_mosaic.version = 11 : i64} {
  func.func @_linear_kernel(%arg0: i32, %arg1: i32, %arg2: i32, %arg3: memref<16x32xf32, #tpu.memory_space<vmem>>, %arg4: memref<32x32xf32, #tpu.memory_space<vmem>>, %arg5: memref<1x32xf32, #tpu.memory_space<vmem>>, %arg6: memref<16x32xf32, #tpu.memory_space<vmem>>, %arg7: memref<16x32xf32, #tpu.memory_space<vmem>>) attributes {dimension_semantics = [#tpu.dimension_semantics<parallel>, #tpu.dimension_semantics<parallel>, #tpu.dimension_semantics<arbitrary>], iteration_bounds = array<i64: 1, 1, 1>, scalar_prefetch = 0 : i64, scratch_operands = 1 : i64, tpu.core_type = #tpu.core_type<tc>, window_params = [{transform_indices = @transform_0, window_bounds = array<i64: 16, 32>}, {transform_indices = @transform_1, window_bounds = array<i64: 32, 32>}, {transform_indices = @transform_2, window_bounds = array<i64: 1, 32>}, {transform_indices = @transform_3, window_bounds = array<i64: 16, 32>}]} {
    %c0_i32 = arith.constant 0 : i32
    %0 = arith.cmpi eq, %arg2, %c0_i32 : i32
    %1 = arith.extui %0 : i1 to i32
    %c0_i32_0 = arith.constant 0 : i32
    %2 = arith.cmpi ne, %1, %c0_i32_0 : i32
    scf.if %2 {
      %cst_10 = arith.constant 0.000000e+00 : f32
      %12 = vector.broadcast %cst_10 : f32 to vector<16x32xf32>
      %c0_11 = arith.constant 0 : index
      %c0_12 = arith.constant 0 : index
      %13 = vector.load %arg7[%c0_11, %c0_12] : memref<16x32xf32, #tpu.memory_space<vmem>>, vector<16x32xf32>
      tpu.vector_store %arg7[%c0_11, %c0_12], %12 {strides = array<i32>} : memref<16x32xf32, #tpu.memory_space<vmem>>, vector<16x32xf32>,
    } else {
    }
    %c0 = arith.constant 0 : index
    %c0_1 = arith.constant 0 : index
    %3 = vector.load %arg7[%c0, %c0_1] : memref<16x32xf32, #tpu.memory_space<vmem>>, vector<16x32xf32>
    %c0_2 = arith.constant 0 : index
    %c0_3 = arith.constant 0 : index
    %4 = vector.load %arg3[%c0_2, %c0_3] : memref<16x32xf32, #tpu.memory_space<vmem>>, vector<16x32xf32>
    %c0_4 = arith.constant 0 : index
    %c0_5 = arith.constant 0 : index
    %5 = vector.load %arg4[%c0_4, %c0_5] : memref<32x32xf32, #tpu.memory_space<vmem>>, vector<32x32xf32>
    %cst = arith.constant dense<0.000000e+00> : vector<16x32xf32>
    %6 = tpu.matmul %4, %5, %cst {dimension_numbers = #tpu.dot_dimension_numbers<[1], [0], [0], [1], [0, 0, 1, 1], [], []>} : vector<16x32xf32>, vector<32x32xf32>, vector<16x32xf32> -> vector<16x32xf32>
    %7 = arith.addf %3, %6 : vector<16x32xf32>
    %c0_6 = arith.constant 0 : index
    %c0_7 = arith.constant 0 : index
    %8 = vector.load %arg7[%c0_6, %c0_7] : memref<16x32xf32, #tpu.memory_space<vmem>>, vector<16x32xf32>
    tpu.vector_store %arg7[%c0_6, %c0_7], %7 {strides = array<i32>} : memref<16x32xf32, #tpu.memory_space<vmem>>, vector<16x32xf32>,
    %c0_i32_8 = arith.constant 0 : i32
    %9 = arith.cmpi eq, %arg2, %c0_i32_8 : i32
    %10 = arith.extui %9 : i1 to i32
    %c0_i32_9 = arith.constant 0 : i32
    %11 = arith.cmpi ne, %10, %c0_i32_9 : i32
    scf.if %11 {
      %c0_10 = arith.constant 0 : index
      %c0_11 = arith.constant 0 : index
      %12 = vector.load %arg7[%c0_10, %c0_11] : memref<16x32xf32, #tpu.memory_space<vmem>>, vector<16x32xf32>
      %c0_12 = arith.constant 0 : index
      %c0_13 = arith.constant 0 : index
      %13 = vector.load %arg5[%c0_12, %c0_13] : memref<1x32xf32, #tpu.memory_space<vmem>>, vector<1x32xf32>
      %14 = vector.broadcast %13 : vector<1x32xf32> to vector<16x32xf32>
      %15 = arith.addf %12, %14 : vector<16x32xf32>
      %c0_14 = arith.constant 0 : index
      %c0_15 = arith.constant 0 : index
      %16 = vector.load %arg6[%c0_14, %c0_15] : memref<16x32xf32, #tpu.memory_space<vmem>>, vector<16x32xf32>
      tpu.vector_store %arg6[%c0_14, %c0_15], %15 {strides = array<i32>} : memref<16x32xf32, #tpu.memory_space<vmem>>, vector<16x32xf32>,
    } else {
    }
    return
  }
  func.func @transform_0(%arg0: i32, %arg1: i32, %arg2: i32) -> (i32, i32) {
    %c0_i32 = arith.constant 0 : i32
    return %arg0, %arg2 : i32, i32
  }
  func.func @transform_1(%arg0: i32, %arg1: i32, %arg2: i32) -> (i32, i32) {
    %c0_i32 = arith.constant 0 : i32
    return %arg2, %arg1 : i32, i32
  }
  func.func @transform_2(%arg0: i32, %arg1: i32, %arg2: i32) -> (i32, i32) {
    %c0_i32 = arith.constant 0 : i32
    %c0_i32_0 = arith.constant 0 : i32
    return %c0_i32, %arg1 : i32, i32
  }
  func.func @transform_3(%arg0: i32, %arg1: i32, %arg2: i32) -> (i32, i32) {
    %c0_i32 = arith.constant 0 : i32
    return %arg0, %arg1 : i32, i32
  }
}

</mosaic_0001>

<bundles_post_ra>
// kernel: tpu_custom_call.1
= control target key start
LH: loop header
LB: loop body
LE: loop exit
PB: predicated region body
PF: predicated region fallthrough
CT: control target
= control target key end

     0   :  { %8 = vsyncpa [#allocation4], 0  ;;  %s325_s0 = inlined_call_operand.hbm [shape: f32[16,32], index: 0, kind: input, shape index: {}]   ;;  %s326_s1 = inlined_call_operand.hbm [shape: f32[32,32], index: 1, kind: input, shape index: {}]   ;;  %s327_s2 = inlined_call_operand.vmem [shape: f32[1,32], index: 2, kind: input, shape index: {}]   ;;  %s328_s3 = inlined_call_operand.hbm [shape: f32[16,32], index: 3, kind: output, shape index: {}]  }
   0x1   :  { %9 = vsyncpa [#allocation7], 0 }
   0x2   :  { %10 = vsyncpa [#allocation5], 0  ;;  %s270_s12 = smov [#allocation3]  }
   0x3   :  { %s16_s13 = sshll.u32 %s270_s12, 4  ;;  %s17_s13 = int_to_ptr.vmem [resolvable:$true] %s16_s13 }
   0x4   :  { %s212_s14 = scalar_lea.vmem %s17_s13, 256  ;;  %p217_p1 = scmp.lt.s32.totalorder %s17_s13, %s17_s13 }
   0x5   :  { %p213_p0 = scmp.ne.s32.totalorder %s17_s13, %s212_s14  ;;  %p218_p2 = scmp.lt.s32.totalorder %s212_s14, %s212_s14 }
   0x7   :  { %p219_p3 = por %p218_p2, %p217_p1 }
   0x9   :  { %p220_p4 = pnand %p219_p3, %p213_p0 }
   0xb   :  { %223 = shalt.err (!%p220_p4)
}
   0xc   :  { %s271_s15 = smov 128   ;;  %s272_s16 = smov 8  }
   0xd   :  { %22 = dma.hbm_to_vmem [thread:$0]  %s325_s0, 256, %s17_s13, [#allocation4], %s271_s15, %s271_s15, %s272_s16  }
   0xe   :  { %s273_s19 = smov [#allocation6]  }
   0xf   :  { %s28_s20 = sshll.u32 %s273_s19, 4  ;;  %s29_s20 = int_to_ptr.vmem [resolvable:$true] %s28_s20 }
  0x10   :  { %s232_s21 = scalar_lea.vmem %s29_s20, 512  ;;  %p237_p6 = scmp.lt.s32.totalorder %s29_s20, %s29_s20 }
  0x11   :  { %p233_p5 = scmp.ne.s32.totalorder %s29_s20, %s232_s21  ;;  %p238_p7 = scmp.lt.s32.totalorder %s232_s21, %s232_s21 }
  0x13   :  { %p239_p8 = por %p238_p7, %p237_p6 }
  0x15   :  { %p240_p9 = pnand %p239_p8, %p233_p5 }
  0x17   :  { %243 = shalt.err (!%p240_p9)
}
  0x18   :  { %34 = dma.hbm_to_vmem [thread:$0]  %s326_s1, 512, %s29_s20, [#allocation7], %s271_s15, %s271_s15, %s272_s16  }
  0x19   :  { %264 = dma.done.wait [#allocation4], 256  }
  0x1a   :  { %265 = vsyncadd [#allocation4], 4294967040 }
  0x1b   :  { %266 = dma.done.wait [#allocation7], 512  }
  0x1c   :  { %267 = vsyncadd [#allocation7], 4294966784  ;;  %vm47_vm0 = vcmask 261120   ;;  %v274_v0 = vmov 0.0   ;;  %v57_v1 = vld [vmem:[#allocation6 + $0x18] sm:$0xff]  ;;  %v56_v2 = vld [vmem:[#allocation6 + $0x10] sm:$0xff] }
  0x1d   :  { %49 = vst.msk [vmem:[#allocation2 + $0x8] sm:$0xff] %vm47_vm0, %v274_v0  ;;  %48 = vst.msk [vmem:[#allocation2] sm:$0xff] %vm47_vm0, %v274_v0  ;;  %187 = vmatprep.subr.mxu0 %v57_v1  ;;  %v52_v3 = vld [vmem:[#allocation3] sm:$0xff]  ;;  %v55_v4 = vld [vmem:[#allocation6 + $0x8] sm:$0xff]  ;;  %s275_s24 = smov [#allocation8]  }
  0x1e   :  { %188 = vmatpush3.msra.mxu0 %v57_v1  ;;  %195 = vmatprep.mubr.msk.f32.mxu0 %vm47_vm0, %v52_v3  ;;  %v54_v5 = vld [vmem:[#allocation6] sm:$0xff]  ;;  %v53_v6 = vld [vmem:[#allocation3 + $0x8] sm:$0xff]  ;;  %s165_s25 = sshll.u32 %s275_s24, 4  ;;  %s166_s25 = int_to_ptr.vmem [resolvable:$true] %s165_s25 }
  0x1f   :  { %189 = vmatprep.subr.mxu0 %v56_v2  ;;  %v180_v13 = vld [vmem:[%s327_s2] ss:$0 sm:$0xff]  ;;  %s244_s26 = scalar_lea.vmem %s166_s25, 256  ;;  %p249_p11 = scmp.lt.s32.totalorder %s166_s25, %s166_s25 }
  0x20   :  { %190 = vmatpush3.msra.mxu0 %v56_v2  ;;  %p245_p10 = scmp.ne.s32.totalorder %s166_s25, %s244_s26  ;;  %p250_p12 = scmp.lt.s32.totalorder %s244_s26, %s244_s26 }
  0x21   :  { %191 = vmatprep.subr.mxu0 %v55_v4 }
  0x22   :  { %192 = vmatpush3.msra.mxu0 %v55_v4  ;;  %p251_p13 = por %p250_p12, %p249_p11 }
  0x23   :  { %193 = vmatprep.subr.mxu0 %v54_v5 }
  0x24   :  { %194 = vmatpush3.msra.mxu0 %v54_v5  ;;  %v51_v7 = vld [vmem:[#allocation2 + $0x8] sm:$0xff]  ;;  %v50_v9 = vld [vmem:[#allocation2] sm:$0xff]  ;;  %p252_p0 = pnand %p251_p13, %p245_p10 }
  0x25   :  { %196 = vmatmul.mubr.msk.f32.vlgmr.msra.gmra.mxu0 %vm47_vm0, %v53_v6 }
  0xe5   :  { %v197_v8 = vpop.f32.mrf.mxu0 }
  0xe6   :  { %v141_v10 = vadd.f32 %v197_v8, %v51_v7 }
  0xe7   :  { %v131_v11 = vpop.f32.mrf.mxu0 }
  0xe8   :  { %143 = vst.msk [vmem:[#allocation2 + $0x8] sm:$0xff] %vm47_vm0, %v141_v10  ;;  %v140_v12 = vadd.f32 %v131_v11, %v50_v9 }
  0xea   :  { %142 = vst.msk [vmem:[#allocation2] sm:$0xff] %vm47_vm0, %v140_v12 }
  0xef   :  { %v148_v14 = vld [vmem:[#allocation2 + $0x8] sm:$0xff] }
  0xf0   :  { %v157_v15 = vadd.f32 %v180_v13, %v148_v14 }
  0xf1   :  { %v147_v16 = vld [vmem:[#allocation2] sm:$0xff] }
  0xf2   :  { %v156_v17 = vadd.f32 %v180_v13, %v147_v16  ;;  %159 = vst.msk [vmem:[#allocation8 + $0x8] sm:$0xff] %vm47_vm0, %v157_v15 }
  0xf4   :  { %158 = vst.msk [vmem:[#allocation8] sm:$0xff] %vm47_vm0, %v156_v17 }
  0xf5   :  { %255 = shalt.err (!%p252_p0)
}
  0xf6   :  { %171 = dma.vmem_to_hbm [thread:$0]  %s166_s25, 256, %s328_s3, [#allocation5], %s271_s15, %s271_s15, %s272_s16  }
  0xf7   :  { %268 = dma.done.wait [#allocation5], 256  }
  0xf8   :  { %269 = vsyncadd [#allocation5], 4294967040 }
  0xf9   :  { %175 = vsyncpa [#allocation4], 1 }
  0xfa   :  { %176 = vsyncpa [#allocation7], 1 }
  0xfb   :  { %177 = vsyncpa [#allocation5], 1 }

</bundles_post_ra>
